<compile_context>
chip_gen: v5e
topology: v5e:2x2
jax: 0.10.0
libtpu: 0.0.40
codegen_flags: <defaults>
</compile_context>

<pallas_src>
import jax
import jax.numpy as jnp
from jax.experimental import pallas as pl
from jax.experimental.pallas import tpu as pltpu

_LANES = 128
_BLOCK_BYTES_TARGET = 4 << 20      # ~4 MiB per block (per the perf review)
_SINGLE_BLOCK_BYTES = 128 << 10    # below this, a 1-step grid is fine on all gens
_VMEM_LIMIT_DEFAULT = 32 * 1024 * 1024


def _pick_vmem_limit():
    # 32 MiB = 2x the double-buffered in+out footprint at 4 MiB blocks.
    # Clamp to half the physical VMEM if we can query it (v7x: 64 MiB -> 32 MiB,
    # v5e/v6e: 128 MiB -> stays 32 MiB).
    try:
        cap = pltpu.get_tpu_info().vmem_capacity_bytes
        return int(min(_VMEM_LIMIT_DEFAULT, cap // 2))
    except Exception:
        return _VMEM_LIMIT_DEFAULT


def _exp_kernel(x_ref, o_ref):
    x = x_ref[...]
    if x.dtype != jnp.float32:
        # Upcast sub-32-bit / integer dtypes so exp runs on the f32 EUP path
        # everywhere (v5e has no bf16 EUP/VPU). Free filler in a mem-bound kernel.
        x = x.astype(jnp.float32)
    o_ref[...] = jnp.exp(x).astype(o_ref.dtype)


def exp_wrapper(t):
    """Pallas equivalent of ExpWrapper.forward: returns exp(t)."""
    orig_shape = t.shape
    in_dtype = t.dtype
    # torch.exp promotes integer/bool tensors to floating point.
    out_dtype = in_dtype if jnp.issubdtype(in_dtype, jnp.floating) else jnp.float32
    itemsize = jnp.dtype(in_dtype).itemsize
    out_itemsize = jnp.dtype(out_dtype).itemsize
    n = t.size

    # Sublane packing multiple for the input: f32 -> 8 rows, bf16 -> 16, int8 -> 32.
    sub = max(8, 32 // itemsize)

    # Flatten to a lane-dense slab. Only pad to the 128-lane multiple; the ragged
    # final grid step is masked by Pallas, so no padding to a full tile is needed.
    rows = pl.cdiv(n, _LANES)
    padded_len = rows * _LANES
    flat = t.reshape(-1)
    needs_pad = padded_len != n
    if needs_pad:
        # TODO(synk): a masked pltpu.store on the final tail would avoid this
        # pad/slice HBM round trip for element counts not divisible by 128.
        flat = jnp.pad(flat, (0, padded_len - n))
    slab = flat.reshape(rows, _LANES)

    total_bytes = rows * _LANES * itemsize
    # Size the block by the wider of in/out dtypes so the double-buffered
    # footprint stays bounded even when an int8/bf16 input produces f32 output.
    bytes_per_row_max = _LANES * max(itemsize, out_itemsize)
    target_tile_rows = max(sub, (_BLOCK_BYTES_TARGET // bytes_per_row_max) // sub * sub)

    if total_bytes <= _SINGLE_BLOCK_BYTES:
        # Truly tiny input: one block covering the whole slab (block_shape equal
        # to the full array dims is always legal), 1-step grid, zero per-step
        # pipeline overhead.
        tile_rows = rows
    else:
        # Force at least 2 grid steps: v7x's 2 TensorCores both get work via the
        # "parallel" grid axis, and input/output DMA overlaps across steps.
        half_rows = pl.cdiv(pl.cdiv(rows, 2), sub) * sub
        tile_rows = min(target_tile_rows, half_rows)

    grid = (pl.cdiv(rows, tile_rows),)

    cost = pl.CostEstimate(
        flops=0,
        transcendentals=n,
        bytes_accessed=n * (itemsize + out_itemsize),
    )

    out_slab = pl.pallas_call(
        _exp_kernel,
        out_shape=jax.ShapeDtypeStruct((rows, _LANES), out_dtype),
        grid_spec=pl.GridSpec(
            grid=grid,
            in_specs=[pl.BlockSpec((tile_rows, _LANES), lambda i: (i, 0))],
            out_specs=pl.BlockSpec((tile_rows, _LANES), lambda i: (i, 0)),
        ),
        compiler_params=pltpu.CompilerParams(
            dimension_semantics=("parallel",),
            vmem_limit_bytes=_pick_vmem_limit(),
        ),
        cost_estimate=cost,
    )(slab)

    out = out_slab.reshape(-1)
    if needs_pad:
        out = out[:n]
    return out.reshape(orig_shape)


if __name__ == "__main__":
    key = jax.random.PRNGKey(0)
    x = jax.random.normal(key, (2, 4, 16, 16), dtype=jnp.float32)

    y = exp_wrapper(x)
    y = jax.block_until_ready(y)

    # Correctness check against plain JAX reference.
    y_ref = jnp.exp(x)
    assert y.shape == x.shape and y.dtype == x.dtype
    assert jnp.allclose(y, y_ref, rtol=1e-6, atol=1e-6)

    print("KERNEL_OK")
</pallas_src>

<mosaic_0001>
module attributes {stable_mosaic.version = 11 : i64} {
  func.func @_exp_kernel(%arg0: i32, %arg1: memref<16x128xf32, #tpu.memory_space<vmem>>, %arg2: memref<16x128xf32, #tpu.memory_space<vmem>>) attributes {dimension_semantics = [#tpu.dimension_semantics<parallel>], iteration_bounds = array<i64: 1>, scalar_prefetch = 0 : i64, scratch_operands = 0 : i64, tpu.core_type = #tpu.core_type<tc>, window_params = [{transform_indices = @transform_0, window_bounds = array<i64: 16, 128>}, {transform_indices = @transform_1, window_bounds = array<i64: 16, 128>}]} {
    %c0 = arith.constant 0 : index
    %c0_0 = arith.constant 0 : index
    %0 = vector.load %arg1[%c0, %c0_0] : memref<16x128xf32, #tpu.memory_space<vmem>>, vector<16x128xf32>
    %1 = math.exp %0 : vector<16x128xf32>
    %c0_1 = arith.constant 0 : index
    %c0_2 = arith.constant 0 : index
    %2 = vector.load %arg2[%c0_1, %c0_2] : memref<16x128xf32, #tpu.memory_space<vmem>>, vector<16x128xf32>
    tpu.vector_store %arg2[%c0_1, %c0_2], %1 {strides = array<i32>} : memref<16x128xf32, #tpu.memory_space<vmem>>, vector<16x128xf32>,
    return
  }
  func.func @transform_0(%arg0: i32) -> (i32, i32) {
    %c0_i32 = arith.constant 0 : i32
    %c0_i32_0 = arith.constant 0 : i32
    return %arg0, %c0_i32 : i32, i32
  }
  func.func @transform_1(%arg0: i32) -> (i32, i32) {
    %c0_i32 = arith.constant 0 : i32
    %c0_i32_0 = arith.constant 0 : i32
    return %arg0, %c0_i32 : i32, i32
  }
}

</mosaic_0001>

<bundles_post_ra>
// kernel: tpu_custom_call.1
= control target key start
LH: loop header
LB: loop body
LE: loop exit
PB: predicated region body
PF: predicated region fallthrough
CT: control target
= control target key end

     0   :  { %6 = vsyncpa [#allocation3], 0  ;;  %s132_s0 = inlined_call_operand.hbm [shape: f32[16,128], index: 0, kind: input, shape index: {}]   ;;  %s133_s1 = inlined_call_operand.hbm [shape: f32[16,128], index: 1, kind: output, shape index: {}]  }
   0x1   :  { %7 = vsyncpa [#allocation4], 0  ;;  %s12_s8 = sshll.u32 %s132_s0, 4  ;;  %s112_s9 = smov [#allocation2]   ;;  %s13_s8 = int_to_ptr.hbm [resolvable:$true] %s12_s8 }
   0x2   :  { %s14_s10 = sshll.u32 %s112_s9, 4  ;;  %s113_s11 = smov 128   ;;  %s15_s10 = int_to_ptr.vmem [resolvable:$true] %s14_s10 }
   0x3   :  { %s114_s12 = smov 8  }
   0x4   :  { %20 = dma.hbm_to_vmem [thread:$0]  %s13_s8, 256, %s15_s10, [#allocation3], %s113_s11, %s113_s11, %s114_s12  }
   0x5   :  { %108 = dma.done.wait [#allocation3], 256  }
   0x6   :  { %109 = vsyncadd [#allocation3], 4294967040  ;;  %v25_v0 = vld [vmem:[#allocation2] sm:$0xff]  ;;  %v26_v1 = vld [vmem:[#allocation2 + $0x8] sm:$0xff]  ;;  %s115_s13 = smov [#allocation5]   ;;  %s39_s0 = sshll.u32 %s133_s1, 4  ;;  %s40_s0 = int_to_ptr.hbm [resolvable:$true] %s39_s0 }
   0x7   :  { %v27_v2 = vmul.f32 1.442695, %v25_v0  ;;  %v29_v3 = vmul.f32 1.442695, %v26_v1  ;;  %s37_s14 = sshll.u32 %s115_s13, 4  ;;  %s38_s14 = int_to_ptr.vmem [resolvable:$true] %s37_s14 }
   0x9   :  { %56 = vpow2.f32 %v27_v2 }
   0xa   :  { %58 = vpow2.f32 %v29_v3 }
   0xf   :  { %v57_v4 = vpop.eup %56 }
  0x10   :  { %v59_v5 = vpop.eup %58  ;;  %31 = vst [vmem:[#allocation5] sm:$0xff] %v57_v4 }
  0x11   :  { %32 = vst [vmem:[#allocation5 + $0x8] sm:$0xff] %v59_v5 }
  0x12   :  { %45 = dma.vmem_to_hbm [thread:$0]  %s38_s14, 256, %s40_s0, [#allocation4], %s113_s11, %s113_s11, %s114_s12  }
  0x13   :  { %110 = dma.done.wait [#allocation4], 256  }
  0x14   :  { %111 = vsyncadd [#allocation4], 4294967040 }
  0x15   :  { %50 = vsyncpa [#allocation3], 1 }
  0x16   :  { %51 = vsyncpa [#allocation4], 1 }

</bundles_post_ra>
